<compile_context>
chip_gen: v7x
topology: tpu7x:2x2x1
jax: 0.10.0
libtpu: 0.0.40
codegen_flags: <defaults>
</compile_context>

<pallas_src>
import functools

import jax
import jax.numpy as jnp
from jax.experimental import pallas as pl
from jax.experimental.pallas import tpu as pltpu


def _round_up(x, m):
    return (x + m - 1) // m * m


def _pick_tile(total, cap, base=128):
    """Largest multiple of `base` that divides `total` (a multiple of base)
    and is <= cap.  Bounds padding waste to `base` instead of the tile size."""
    t = max(base, (min(cap, total) // base) * base)
    while t > base:
        if total % t == 0:
            return t
        t -= base
    return base


# ----------------------------- kernels --------------------------------------


def _probe_kernel_f32(x_ref, wt_ref, b_ref, o_ref):
    """f32 output: accumulate directly into o_ref, bias folded into k==0 init."""
    @pl.when(pl.program_id(2) == 0)
    def _():
        o_ref[...] = jnp.broadcast_to(b_ref[...], o_ref.shape)

    o_ref[...] += jnp.dot(
        x_ref[...], wt_ref[...], preferred_element_type=jnp.float32
    )


def _probe_kernel_acc(x_ref, wt_ref, b_ref, o_ref, acc_ref):
    """Non-f32 output: f32 VMEM accumulator, cast once on the last K step."""
    k = pl.program_id(2)

    @pl.when(k == 0)
    def _():
        acc_ref[...] = jnp.broadcast_to(b_ref[...], acc_ref.shape)

    acc_ref[...] += jnp.dot(
        x_ref[...], wt_ref[...], preferred_element_type=jnp.float32
    )

    @pl.when(k == pl.num_programs(2) - 1)
    def _():
        o_ref[...] = acc_ref[...].astype(o_ref.dtype)


def _weight_block_spec(tk, tn, deep):
    idx = lambda i, j, k: (k, j)
    if deep:
        # 3-deep buffering keeps the HBM weight stream saturated when the
        # per-tile MXU work is microscopic (tiny batch).
        try:
            return pl.BlockSpec((tk, tn), idx, pipeline_mode=pl.Buffered(3))
        except TypeError:  # BlockSpec without pipeline_mode support
            pass
    return pl.BlockSpec((tk, tn), idx)


# ----------------------------- init (cold path) ------------------------------


def init_linear_spatial_probe(key, d_model, grid_size, num_classes,
                              compute_dtype=jnp.float32):
    """One-time parameter construction + kernel-friendly weight prep.

    Returns (weight, bias, weight_t_padded, bias_padded):
      weight          [out_features, d_model] f32 (PyTorch layout, reference)
      bias            [out_features]          f32
      weight_t_padded [K_pad, N_pad]          compute_dtype (transposed, padded)
      bias_padded     [1, N_pad]              f32
    The padded/cast weight lives persistently in HBM; the hot path never
    relayouts, re-pads or re-casts it.
    """
    out_features = grid_size[0] * grid_size[1] * grid_size[2] * num_classes
    # nn.init.xavier_normal_ / nn.init.zeros_
    std = (2.0 / (d_model + out_features)) ** 0.5
    weight = std * jax.random.normal(key, (out_features, d_model), jnp.float32)
    bias = jnp.zeros((out_features,), jnp.float32)

    k_pad = _round_up(d_model, 128)
    n_pad = _round_up(out_features, 128)
    weight_t_padded = jnp.pad(
        weight.T, ((0, k_pad - d_model), (0, n_pad - out_features))
    ).astype(compute_dtype)
    bias_padded = jnp.pad(bias, (0, n_pad - out_features)).reshape(1, n_pad)
    return weight, bias, weight_t_padded, bias_padded


# ----------------------------- forward (hot path) ----------------------------


@functools.partial(jax.jit, static_argnames=("grid_size", "num_classes"))
def linear_spatial_probe(x, weight_t_padded, bias_padded, grid_size, num_classes):
    """Forward pass of LinearSpatialProbe.

    x:               [B, d_model]
    weight_t_padded: [K_pad, N_pad]  (prepped once at init)
    bias_padded:     [1, N_pad]      f32
    returns          [B, num_classes, grid_size[2], grid_size[1], grid_size[0]]
    """
    B, K = x.shape
    K_pad, N_pad = weight_t_padded.shape
    N = grid_size[0] * grid_size[1] * grid_size[2] * num_classes
    assert K_pad == _round_up(K, 128) and N_pad == _round_up(N, 128), (
        "weight_t_padded does not match x / grid_size; re-run init_linear_spatial_probe")

    out_dtype = x.dtype
    compute_dtype = weight_t_padded.dtype
    cd_item = jnp.dtype(compute_dtype).itemsize
    out_item = jnp.dtype(out_dtype).itemsize

    # ---- tile selection (sublane-aligned M, lane-dense N, 128-bounded pad) --
    m_align = 16 if cd_item < 4 else 8      # bf16 packs 16 rows per sublane reg
    tm = min(512, _round_up(B, m_align))
    B_pad = _round_up(B, tm)
    tk = _pick_tile(K_pad, 512)
    tn = _pick_tile(N_pad, 1024)
    # Keep >= 2 independent tiles when possible so the "parallel" grid axes can
    # shard across v7x's two TensorCores.
    if B_pad // tm == 1 and N_pad // tn == 1 and N_pad >= 256:
        tn = _pick_tile(N_pad, N_pad // 2)

    grid = (B_pad // tm, N_pad // tn, K_pad // tk)

    # ---- hot-path activation prep only (weight/bias were prepped at init) ---
    x_c = x.astype(compute_dtype)
    if (B_pad, K_pad) != (B, K):
        x_c = jnp.pad(x_c, ((0, B_pad - B), (0, K_pad - K)))

    # ---- specs ---------------------------------------------------------------
    deep_weight = (tm <= 64) and (grid[1] * grid[2] >= 3)
    in_specs = [
        pl.BlockSpec((tm, tk), lambda i, j, k: (i, k)),
        _weight_block_spec(tk, tn, deep_weight),
        pl.BlockSpec((1, tn), lambda i, j, k: (0, j)),
    ]
    out_spec = pl.BlockSpec((tm, tn), lambda i, j, k: (i, j))

    if out_dtype == jnp.float32:
        kernel = _probe_kernel_f32
        scratch_shapes = []
        acc_bytes = 0
    else:
        kernel = _probe_kernel_acc
        scratch_shapes = [pltpu.VMEM((tm, tn), jnp.float32)]
        acc_bytes = tm * tn * 4

    # ---- VMEM budget derived from the actual (multi-)buffered footprint -----
    w_bufs = 3 if deep_weight else 2
    footprint = (2 * tm * tk * cd_item            # x tiles (double-buffered)
                 + w_bufs * tk * tn * cd_item     # weight tiles
                 + 2 * tn * 4                     # bias tiles
                 + 2 * tm * tn * out_item         # output tiles
                 + acc_bytes)
    vmem_limit = int(min(48 * 1024 * 1024,
                         max(16 * 1024 * 1024, footprint * 3 // 2 + (4 << 20))))

    # ---- cost estimate: count operand re-reads across independent grid axes -
    bytes_accessed = (
        B_pad * K_pad * cd_item * (N_pad // tn)      # x re-read per N tile
        + K_pad * N_pad * cd_item * (B_pad // tm)    # weight re-read per B tile
        + N_pad * 4 * (B_pad // tm)                  # bias
        + B_pad * N_pad * out_item                   # output
    )
    cost = pl.CostEstimate(flops=2 * B_pad * K_pad * N_pad,
                           transcendentals=0,
                           bytes_accessed=bytes_accessed)

    out = pl.pallas_call(
        kernel,
        out_shape=jax.ShapeDtypeStruct((B_pad, N_pad), out_dtype),
        grid_spec=pltpu.PrefetchScalarGridSpec(
            num_scalar_prefetch=0,
            grid=grid,
            in_specs=in_specs,
            out_specs=out_spec,
            scratch_shapes=scratch_shapes,
        ),
        compiler_params=pltpu.CompilerParams(
            dimension_semantics=("parallel", "parallel", "arbitrary"),
            vmem_limit_bytes=vmem_limit,
        ),
        cost_estimate=cost,
    )(x_c, weight_t_padded, bias_padded)

    out = out[:B, :N]
    # torch .view(B, C, G2, G1, G0) -- pure layout glue, stays in plain JAX.
    return out.reshape(B, num_classes, grid_size[2], grid_size[1], grid_size[0])


# ----------------------------- demo / self-check -----------------------------


if __name__ == "__main__":
    key = jax.random.PRNGKey(0)
    k1, k2, k3, k4 = jax.random.split(key, 4)

    # ---- Config 1: tiny probe, f32 end-to-end (direct-accumulate kernel) ----
    d_model, grid_size, num_classes, B = 32, (4, 4, 2), 4, 2
    weight, bias, w_t_pad, b_pad = init_linear_spatial_probe(
        k1, d_model, grid_size, num_classes, compute_dtype=jnp.float32)
    x = jax.random.normal(k2, (B, d_model), jnp.float32)

    out = jax.block_until_ready(
        linear_spatial_probe(x, w_t_pad, b_pad, grid_size, num_classes))
    ref = (x @ weight.T + bias).reshape(
        B, num_classes, grid_size[2], grid_size[1], grid_size[0])
    assert out.shape == ref.shape
    assert jnp.allclose(out, ref, atol=1e-5, rtol=1e-5)

    # ---- Config 2: larger probe, persistent bf16 weight, small batch --------
    #     (exercises multi-step K reduction, multiple N tiles, and the
    #      3-deep weight buffering path for tiny batches)
    d_model, grid_size, num_classes, B = 1280, (8, 8, 8), 8, 8
    weight, bias, w_t_pad, b_pad = init_linear_spatial_probe(
        k3, d_model, grid_size, num_classes, compute_dtype=jnp.bfloat16)
    x = jax.random.normal(k4, (B, d_model), jnp.float32)
    ref = (x @ weight.T + bias).reshape(
        B, num_classes, grid_size[2], grid_size[1], grid_size[0])

    # f32 activations -> f32 output, direct accumulation into the output block.
    out_f32 = jax.block_until_ready(
        linear_spatial_probe(x, w_t_pad, b_pad, grid_size, num_classes))
    assert jnp.allclose(out_f32, ref, atol=5e-2, rtol=5e-2)

    # bf16 activations -> bf16 output via the f32 scratch-accumulator kernel.
    out_bf16 = jax.block_until_ready(
        linear_spatial_probe(x.astype(jnp.bfloat16), w_t_pad, b_pad,
                             grid_size, num_classes))
    assert out_bf16.dtype == jnp.bfloat16
    assert jnp.allclose(out_bf16.astype(jnp.float32), ref, atol=1e-1, rtol=1e-1)

    print("KERNEL_OK")
</pallas_src>

<mosaic_0001>
module attributes {stable_mosaic.version = 11 : i64} {
  func.func @_probe_kernel_f32(%arg0: i32, %arg1: i32, %arg2: i32, %arg3: memref<8x128xf32, #tpu.memory_space<vmem>>, %arg4: memref<128x128xf32, #tpu.memory_space<vmem>>, %arg5: memref<1x128xf32, #tpu.memory_space<vmem>>, %arg6: memref<8x128xf32, #tpu.memory_space<vmem>>) attributes {dimension_semantics = [#tpu.dimension_semantics<parallel>, #tpu.dimension_semantics<parallel>, #tpu.dimension_semantics<arbitrary>], iteration_bounds = array<i64: 1, 1, 1>, scalar_prefetch = 0 : i64, scratch_operands = 0 : i64, tpu.core_type = #tpu.core_type<tc>, window_params = [{transform_indices = @transform_0, window_bounds = array<i64: 8, 128>}, {transform_indices = @transform_1, window_bounds = array<i64: 128, 128>}, {transform_indices = @transform_2, window_bounds = array<i64: 1, 128>}, {transform_indices = @transform_3, window_bounds = array<i64: 8, 128>}]} {
    %c0_i32 = arith.constant 0 : i32
    %0 = arith.cmpi eq, %arg2, %c0_i32 : i32
    %1 = arith.extui %0 : i1 to i32
    %c0_i32_0 = arith.constant 0 : i32
    %2 = arith.cmpi ne, %1, %c0_i32_0 : i32
    scf.if %2 {
      %c0_8 = arith.constant 0 : index
      %c0_9 = arith.constant 0 : index
      %9 = vector.load %arg5[%c0_8, %c0_9] : memref<1x128xf32, #tpu.memory_space<vmem>>, vector<1x128xf32>
      %10 = vector.shape_cast %9 : vector<1x128xf32> to vector<1x128xf32>
      %11 = vector.broadcast %10 : vector<1x128xf32> to vector<8x128xf32>
      %c0_10 = arith.constant 0 : index
      %c0_11 = arith.constant 0 : index
      %12 = vector.load %arg6[%c0_10, %c0_11] : memref<8x128xf32, #tpu.memory_space<vmem>>, vector<8x128xf32>
      tpu.vector_store %arg6[%c0_10, %c0_11], %11 {strides = array<i32>} : memref<8x128xf32, #tpu.memory_space<vmem>>, vector<8x128xf32>,
    } else {
    }
    %c0 = arith.constant 0 : index
    %c0_1 = arith.constant 0 : index
    %3 = vector.load %arg6[%c0, %c0_1] : memref<8x128xf32, #tpu.memory_space<vmem>>, vector<8x128xf32>
    %c0_2 = arith.constant 0 : index
    %c0_3 = arith.constant 0 : index
    %4 = vector.load %arg3[%c0_2, %c0_3] : memref<8x128xf32, #tpu.memory_space<vmem>>, vector<8x128xf32>
    %c0_4 = arith.constant 0 : index
    %c0_5 = arith.constant 0 : index
    %5 = vector.load %arg4[%c0_4, %c0_5] : memref<128x128xf32, #tpu.memory_space<vmem>>, vector<128x128xf32>
    %cst = arith.constant dense<0.000000e+00> : vector<8x128xf32>
    %6 = tpu.matmul %4, %5, %cst {dimension_numbers = #tpu.dot_dimension_numbers<[1], [0], [0], [1], [0, 0, 1, 1], [], []>} : vector<8x128xf32>, vector<128x128xf32>, vector<8x128xf32> -> vector<8x128xf32>
    %7 = arith.addf %3, %6 : vector<8x128xf32>
    %c0_6 = arith.constant 0 : index
    %c0_7 = arith.constant 0 : index
    %8 = vector.load %arg6[%c0_6, %c0_7] : memref<8x128xf32, #tpu.memory_space<vmem>>, vector<8x128xf32>
    tpu.vector_store %arg6[%c0_6, %c0_7], %7 {strides = array<i32>} : memref<8x128xf32, #tpu.memory_space<vmem>>, vector<8x128xf32>,
    return
  }
  func.func @transform_0(%arg0: i32, %arg1: i32, %arg2: i32) -> (i32, i32) {
    %c0_i32 = arith.constant 0 : i32
    return %arg0, %arg2 : i32, i32
  }
  func.func @transform_1(%arg0: i32, %arg1: i32, %arg2: i32) -> (i32, i32) {
    %c0_i32 = arith.constant 0 : i32
    return %arg2, %arg1 : i32, i32
  }
  func.func @transform_2(%arg0: i32, %arg1: i32, %arg2: i32) -> (i32, i32) {
    %c0_i32 = arith.constant 0 : i32
    %c0_i32_0 = arith.constant 0 : i32
    return %c0_i32, %arg1 : i32, i32
  }
  func.func @transform_3(%arg0: i32, %arg1: i32, %arg2: i32) -> (i32, i32) {
    %c0_i32 = arith.constant 0 : i32
    return %arg0, %arg1 : i32, i32
  }
}

</mosaic_0001>

<bundles_post_ra>
// kernel: linear_spatial_probe.1
= control target key start
LH: loop header
LB: loop body
LE: loop exit
PB: predicated region body
PF: predicated region fallthrough
CT: control target
= control target key end

     0   :  { %8 = vsyncpa [#allocation3], 0  ;;  %s242_s12 = smov [#allocation2]   ;;  %s289_s0 = inlined_call_operand.vmem [shape: f32[8,128], index: 0, kind: input, shape index: {}]   ;;  %s290_s1 = inlined_call_operand.hbm [shape: f32[128,128], index: 1, kind: input, shape index: {}]   ;;  %s291_s2 = inlined_call_operand.vmem [shape: f32[1,128], index: 2, kind: input, shape index: {}]   ;;  %s292_s3 = inlined_call_operand.vmem [shape: f32[8,128], index: 3, kind: output, shape index: {}]  }
   0x1   :  { %s16_s13 = sshll.u32 %s242_s12, 4  ;;  %s218_s16 = scalar_lea.hbm %s290_s1, 2048  ;;  %s17_s13 = int_to_ptr.vmem [resolvable:$true] %s16_s13 }
   0x2   :  { %p219_p0 = scmp.ne.s32.totalorder %s290_s1, %s218_s16  ;;  %p222_p1 = scmp.lt.u32.totalorder %s218_s16, %s290_s1 }
   0x4   :  { %p224_p2 = pnand %p222_p1, %p219_p0 }
   0x6   :  { %227 = shalt.err (!%p224_p2)
}
   0x7   :  { %s228_s21 = scalar_lea.vmem %s17_s13, 2048  ;;  %p233_p4 = scmp.lt.s32.totalorder %s17_s13, %s17_s13 }
   0x8   :  { %p229_p3 = scmp.ne.s32.totalorder %s17_s13, %s228_s21  ;;  %p234_p5 = scmp.lt.s32.totalorder %s228_s21, %s228_s21 }
   0xa   :  { %p235_p6 = por %p234_p5, %p233_p4 }
   0xc   :  { %p236_p7 = pnand %p235_p6, %p229_p3 }
   0xe   :  { %239 = shalt.err (!%p236_p7)
}
   0xf   :  { %s243_s22 = smov 128   ;;  %s244_s23 = smov 8  }
  0x10   :  { %22 = dma.hbm_to_vmem [thread:$0]  %s290_s1, 2048, %s17_s13, [#allocation3], %s243_s22, %s243_s22, %s244_s23  }
  0x11   :  { %240 = dma.done.wait [#allocation3], 2048  }
  0x12   :  { %241 = vsyncadd [#allocation3], 4294965248  ;;  %v245_v0 = vmov 0.0|0.0   ;;  %vm246_vm0 = vmmov 0   ;;  %v247_v1 = vmov 0.0   ;;  %v42_v2 = vld [vmem:[#allocation2] sm:$0xff] }
  0x13   :  { %188 = vmatprep.subr.bf16.mxu0 %v245_v0  ;;  %185 = vmatprep.mubr.msk.f32.mxu0 %vm246_vm0, %v247_v1  ;;  %v43_v3 = vld [vmem:[#allocation2 + $0x8] sm:$0xff]  ;;  %v44_v4 = vld [vmem:[#allocation2 + $0x10] sm:$0xff]  ;;  %v45_v6 = vld [vmem:[#allocation2 + $0x18] sm:$0xff] }
  0x14   :  { %v189_v5 = vpack.c.bf16 %v43_v3, %v42_v2  ;;  %v192_v7 = vpack.c.bf16 %v45_v6, %v44_v4  ;;  %v46_v8 = vld [vmem:[#allocation2 + $0x20] sm:$0xff]  ;;  %v47_v9 = vld [vmem:[#allocation2 + $0x28] sm:$0xff]  ;;  %v48_v11 = vld [vmem:[#allocation2 + $0x30] sm:$0xff] }
  0x15   :  { %v195_v10 = vpack.c.bf16 %v47_v9, %v46_v8  ;;  %v49_v12 = vld [vmem:[#allocation2 + $0x38] sm:$0xff]  ;;  %v50_v14 = vld [vmem:[#allocation2 + $0x40] sm:$0xff]  ;;  %v51_v15 = vld [vmem:[#allocation2 + $0x48] sm:$0xff] }
  0x16   :  { %190 = vmatpush3.bf16.msra.mxu0 %v189_v5  ;;  %v198_v13 = vpack.c.bf16 %v49_v12, %v48_v11  ;;  %v201_v16 = vpack.c.bf16 %v51_v15, %v50_v14  ;;  %v52_v17 = vld [vmem:[#allocation2 + $0x50] sm:$0xff]  ;;  %v53_v18 = vld [vmem:[#allocation2 + $0x58] sm:$0xff]  ;;  %v54_v20 = vld [vmem:[#allocation2 + $0x60] sm:$0xff] }
  0x17   :  { %191 = vmatprep.subr.bf16.mxu0 %v245_v0  ;;  %v204_v19 = vpack.c.bf16 %v53_v18, %v52_v17  ;;  %v55_v21 = vld [vmem:[#allocation2 + $0x68] sm:$0xff]  ;;  %v56_v23 = vld [vmem:[#allocation2 + $0x70] sm:$0xff]  ;;  %v57_v24 = vld [vmem:[#allocation2 + $0x78] sm:$0xff] }
  0x18   :  { %v207_v22 = vpack.c.bf16 %v55_v21, %v54_v20  ;;  %v210_v25 = vpack.c.bf16 %v57_v24, %v56_v23  ;;  %v41_v26 = vld [vmem:[%s289_s0] sm:$0xff] }
  0x19   :  { %v135_v27 = vld [vmem:[%s291_s2] ss:$0 sm:$0xff] }
  0x1a   :  { %193 = vmatpush3.bf16.msra.mxu0 %v192_v7 }
  0x1b   :  { %194 = vmatprep.subr.bf16.mxu0 %v245_v0 }
  0x1e   :  { %196 = vmatpush3.bf16.msra.mxu0 %v195_v10 }
  0x1f   :  { %197 = vmatprep.subr.bf16.mxu0 %v245_v0 }
  0x22   :  { %199 = vmatpush3.bf16.msra.mxu0 %v198_v13 }
  0x23   :  { %200 = vmatprep.subr.bf16.mxu0 %v245_v0 }
  0x26   :  { %202 = vmatpush3.bf16.msra.mxu0 %v201_v16 }
  0x27   :  { %203 = vmatprep.subr.bf16.mxu0 %v245_v0 }
  0x2a   :  { %205 = vmatpush3.bf16.msra.mxu0 %v204_v19 }
  0x2b   :  { %206 = vmatprep.subr.bf16.mxu0 %v245_v0 }
  0x2e   :  { %208 = vmatpush3.bf16.msra.mxu0 %v207_v22 }
  0x2f   :  { %209 = vmatprep.subr.bf16.mxu0 %v245_v0 }
  0x32   :  { %211 = vmatpush3.bf16.msra.mxu0 %v210_v25 }
  0x35   :  { %186 = vmatmul.mubr.f32.vlgmr.msra.gmra.mrb[0].mxu0 %v41_v26 }
 0x108   :  { %v124_v28 = vpop.f32.mrb[0].mxu0 }
 0x109   :  { %v128_v29 = vadd.f32 %v135_v27, %v124_v28  ;;  %v187_v30 = vpop.f32.mrb[1].mxu0 }
 0x10b   :  { %129 = vst [vmem:[%s292_s3] sm:$0xff] %v128_v29 }
 0x10c   :  { %134 = vsyncpa [#allocation3], 1 }

</bundles_post_ra>
